<compile_context>
chip_gen: v5e
topology: v5e:2x2
jax: 0.10.0
libtpu: 0.0.40
codegen_flags: <defaults>
</compile_context>

<pallas_src>
import functools

import jax
import jax.numpy as jnp
from jax.experimental import pallas as pl
from jax.experimental.pallas import tpu as pltpu


def _make_divisible(v, divisor, min_value=None):
    if min_value is None:
        min_value = divisor
    new_v = max(min_value, int(v + divisor / 2) // divisor * divisor)
    if new_v < 0.9 * v:
        new_v += divisor
    return new_v


def _se_kernel(x_ref, w1t_ref, b1_ref, w2t_ref, b2_ref, o_ref, *, inv_hw):
    # x_ref block: (B_TILE, C, HW_pad); weights are full (un-tiled) blocks.
    x = x_ref[...]                                            # native dtype

    # Squeeze: sum over (zero-padded) spatial lanes in f32, scale by 1/(H*W).
    pooled = jnp.sum(x.astype(jnp.float32), axis=2) * inv_hw  # (BT, C) f32

    # Excite: fc1 -> SiLU -> fc2 -> Sigmoid, batched over the B_TILE rows
    # (weights pre-transposed in the wrapper so no in-kernel transpose).
    h = jnp.dot(pooled, w1t_ref[...],
                preferred_element_type=jnp.float32) + b1_ref[...]   # (BT, hid)
    h = h * jax.nn.sigmoid(h)                                        # SiLU
    s = jnp.dot(h, w2t_ref[...],
                preferred_element_type=jnp.float32) + b2_ref[...]    # (BT, C)
    s = jax.nn.sigmoid(s)

    # Scale: broadcast per-channel gate over spatial lanes, in input dtype.
    o_ref[...] = (x * s.astype(x.dtype)[:, :, None]).astype(o_ref.dtype)


def _pick_b_tile(B, C, HWp, itemsize, budget_bytes=3 << 20):
    """Images per grid step: keep one block <= ~3 MiB so 2x(in+out) double-
    buffered blocks stay under the default scoped-VMEM limit on v5e/v6e/v7x."""
    per_img = max(1, C * HWp * itemsize)
    bt = max(1, budget_bytes // per_img)
    bt = min(bt, B)
    if B >= 2:
        bt = min(bt, (B + 1) // 2)  # ensure >= 2 grid steps (v7x: 2 TCs)
    return int(bt)


def se_layer(x, w1, b1, w2, b2):
    """x: (B, C, H, W) NCHW.  Returns x * sigmoid(fc2(silu(fc1(avg_pool(x)))))."""
    B, C, H, W = x.shape
    HW = H * W
    hid = w1.shape[0]
    itemsize = jnp.dtype(x.dtype).itemsize

    # Lane-dense last dim: pad HW up to a multiple of 128 (zeros).
    HWp = pl.cdiv(HW, 128) * 128
    x_flat = x.reshape(B, C, HW)
    if HWp != HW:
        x_flat = jnp.pad(x_flat, ((0, 0), (0, 0), (0, HWp - HW)))

    # Batch tiling; pad B so the grid divides evenly (padded rows are zeros).
    bt = _pick_b_tile(B, C, HWp, itemsize)
    Bp = pl.cdiv(B, bt) * bt
    if Bp != B:
        x_flat = jnp.pad(x_flat, ((0, Bp - B), (0, 0), (0, 0)))

    # Pre-transpose weights so the kernel does row-major (BT,C)@(C,hid) dots.
    w1_t = jnp.asarray(w1).T            # (C, hid)
    w2_t = jnp.asarray(w2).T            # (hid, C)
    b1_row = jnp.asarray(b1).reshape(1, hid)
    b2_row = jnp.asarray(b2).reshape(1, C)

    grid = (Bp // bt,)
    weight_bytes = (w1_t.size + w2_t.size + b1_row.size + b2_row.size) * 4
    cost = pl.CostEstimate(
        flops=2 * B * C * hid * 2 + 2 * B * C * HW,
        transcendentals=B * (hid + C),
        bytes_accessed=2 * B * C * HWp * itemsize + weight_bytes,
    )

    out_flat = pl.pallas_call(
        functools.partial(_se_kernel, inv_hw=1.0 / float(HW)),
        out_shape=jax.ShapeDtypeStruct((Bp, C, HWp), x.dtype),
        grid_spec=pltpu.PrefetchScalarGridSpec(
            num_scalar_prefetch=0,
            grid=grid,
            in_specs=[
                pl.BlockSpec((bt, C, HWp), lambda b: (b, 0, 0)),  # x
                pl.BlockSpec((C, hid), lambda b: (0, 0)),         # W1^T
                pl.BlockSpec((1, hid), lambda b: (0, 0)),         # b1
                pl.BlockSpec((hid, C), lambda b: (0, 0)),         # W2^T
                pl.BlockSpec((1, C), lambda b: (0, 0)),           # b2
            ],
            out_specs=pl.BlockSpec((bt, C, HWp), lambda b: (b, 0, 0)),
        ),
        compiler_params=pltpu.CompilerParams(
            dimension_semantics=("parallel",)),
        cost_estimate=cost,
    )(x_flat, w1_t, b1_row, w2_t, b2_row)

    # Drop batch / spatial padding and restore NCHW.
    return out_flat[:B, :, :HW].reshape(B, C, H, W)


def se_layer_ref(x, w1, b1, w2, b2):
    """Pure-JAX reference mirroring the PyTorch forward."""
    y = jnp.mean(x.astype(jnp.float32), axis=(2, 3))       # (B, C)
    h = y @ w1.T + b1
    h = h * jax.nn.sigmoid(h)                               # SiLU
    s = jax.nn.sigmoid(h @ w2.T + b2)                       # (B, C)
    return (x.astype(jnp.float32) * s[:, :, None, None]).astype(x.dtype)


if __name__ == "__main__":
    # SELayer(inp=16, oup=16, reduction=4) -> hidden = _make_divisible(4, 8) = 8
    inp = oup = 16
    reduction = 4
    hidden = _make_divisible(inp // reduction, 8)

    B, C, H, W = 2, oup, 16, 16

    key = jax.random.PRNGKey(0)
    kx, k1, k2, k3, k4 = jax.random.split(key, 5)

    x = jax.random.normal(kx, (B, C, H, W), dtype=jnp.float32)
    # Deterministic parameter init (nn.Linear-style uniform bounds).
    lim1 = 1.0 / (oup ** 0.5)
    lim2 = 1.0 / (hidden ** 0.5)
    w1 = jax.random.uniform(k1, (hidden, oup), jnp.float32, -lim1, lim1)
    b1 = jax.random.uniform(k2, (hidden,), jnp.float32, -lim1, lim1)
    w2 = jax.random.uniform(k3, (oup, hidden), jnp.float32, -lim2, lim2)
    b2 = jax.random.uniform(k4, (oup,), jnp.float32, -lim2, lim2)

    out = se_layer(x, w1, b1, w2, b2)
    jax.block_until_ready(out)

    ref = se_layer_ref(x, w1, b1, w2, b2)
    assert out.shape == (B, C, H, W)
    assert jnp.allclose(out, ref, atol=1e-5, rtol=1e-5), "mismatch vs reference"

    print("KERNEL_OK")
</pallas_src>

<mosaic_0001>
module attributes {stable_mosaic.version = 11 : i64} {
  func.func @_se_kernel(%arg0: i32, %arg1: memref<1x16x256xf32, #tpu.memory_space<vmem>>, %arg2: memref<16x8xf32, #tpu.memory_space<vmem>>, %arg3: memref<1x8xf32, #tpu.memory_space<vmem>>, %arg4: memref<8x16xf32, #tpu.memory_space<vmem>>, %arg5: memref<1x16xf32, #tpu.memory_space<vmem>>, %arg6: memref<1x16x256xf32, #tpu.memory_space<vmem>>) attributes {dimension_semantics = [#tpu.dimension_semantics<parallel>], iteration_bounds = array<i64: 2>, scalar_prefetch = 0 : i64, scratch_operands = 0 : i64, tpu.core_type = #tpu.core_type<tc>, window_params = [{transform_indices = @transform_0, window_bounds = array<i64: 1, 16, 256>}, {pipeline_mode = #tpu.pipeline_mode<synchronous>, transform_indices = @transform_1, window_bounds = array<i64: 16, 8>}, {pipeline_mode = #tpu.pipeline_mode<synchronous>, transform_indices = @transform_2, window_bounds = array<i64: 1, 8>}, {pipeline_mode = #tpu.pipeline_mode<synchronous>, transform_indices = @transform_3, window_bounds = array<i64: 8, 16>}, {pipeline_mode = #tpu.pipeline_mode<synchronous>, transform_indices = @transform_4, window_bounds = array<i64: 1, 16>}, {transform_indices = @transform_5, window_bounds = array<i64: 1, 16, 256>}]} {
    %c0 = arith.constant 0 : index
    %c0_0 = arith.constant 0 : index
    %c0_1 = arith.constant 0 : index
    %0 = vector.load %arg1[%c0, %c0_0, %c0_1] : memref<1x16x256xf32, #tpu.memory_space<vmem>>, vector<1x16x256xf32>
    %cst = arith.constant dense<0.000000e+00> : vector<1x16xf32>
    %1 = vector.multi_reduction <add>, %0, %cst [2] : vector<1x16x256xf32> to vector<1x16xf32>
    %cst_2 = arith.constant 3.906250e-03 : f32
    %2 = vector.broadcast %cst_2 : f32 to vector<1x16xf32>
    %3 = arith.mulf %1, %2 : vector<1x16xf32>
    %c0_3 = arith.constant 0 : index
    %c0_4 = arith.constant 0 : index
    %4 = vector.load %arg2[%c0_3, %c0_4] : memref<16x8xf32, #tpu.memory_space<vmem>>, vector<16x8xf32>
    %cst_5 = arith.constant dense<0.000000e+00> : vector<1x8xf32>
    %5 = tpu.matmul %3, %4, %cst_5 {dimension_numbers = #tpu.dot_dimension_numbers<[1], [0], [0], [1], [0, 0, 1, 1], [], []>} : vector<1x16xf32>, vector<16x8xf32>, vector<1x8xf32> -> vector<1x8xf32>
    %c0_6 = arith.constant 0 : index
    %c0_7 = arith.constant 0 : index
    %6 = vector.load %arg3[%c0_6, %c0_7] : memref<1x8xf32, #tpu.memory_space<vmem>>, vector<1x8xf32>
    %7 = arith.addf %5, %6 : vector<1x8xf32>
    %8 = arith.negf %7 : vector<1x8xf32>
    %9 = math.exp %8 : vector<1x8xf32>
    %cst_8 = arith.constant 1.000000e+00 : f32
    %10 = vector.broadcast %cst_8 : f32 to vector<1x8xf32>
    %11 = arith.addf %10, %9 : vector<1x8xf32>
    %12 = arith.divf %10, %11 : vector<1x8xf32>
    %13 = arith.mulf %7, %12 : vector<1x8xf32>
    %c0_9 = arith.constant 0 : index
    %c0_10 = arith.constant 0 : index
    %14 = vector.load %arg4[%c0_9, %c0_10] : memref<8x16xf32, #tpu.memory_space<vmem>>, vector<8x16xf32>
    %cst_11 = arith.constant dense<0.000000e+00> : vector<1x16xf32>
    %15 = tpu.matmul %13, %14, %cst_11 {dimension_numbers = #tpu.dot_dimension_numbers<[1], [0], [0], [1], [0, 0, 1, 1], [], []>} : vector<1x8xf32>, vector<8x16xf32>, vector<1x16xf32> -> vector<1x16xf32>
    %c0_12 = arith.constant 0 : index
    %c0_13 = arith.constant 0 : index
    %16 = vector.load %arg5[%c0_12, %c0_13] : memref<1x16xf32, #tpu.memory_space<vmem>>, vector<1x16xf32>
    %17 = arith.addf %15, %16 : vector<1x16xf32>
    %18 = arith.negf %17 : vector<1x16xf32>
    %19 = math.exp %18 : vector<1x16xf32>
    %cst_14 = arith.constant 1.000000e+00 : f32
    %20 = vector.broadcast %cst_14 : f32 to vector<1x16xf32>
    %21 = arith.addf %20, %19 : vector<1x16xf32>
    %22 = arith.divf %20, %21 : vector<1x16xf32>
    %23 = vector.shape_cast %22 : vector<1x16xf32> to vector<1x16x1xf32>
    %24 = vector.broadcast %23 : vector<1x16x1xf32> to vector<1x16x256xf32>
    %25 = arith.mulf %0, %24 : vector<1x16x256xf32>
    %c0_15 = arith.constant 0 : index
    %c0_16 = arith.constant 0 : index
    %c0_17 = arith.constant 0 : index
    %26 = vector.load %arg6[%c0_15, %c0_16, %c0_17] : memref<1x16x256xf32, #tpu.memory_space<vmem>>, vector<1x16x256xf32>
    tpu.vector_store %arg6[%c0_15, %c0_16, %c0_17], %25 {strides = array<i32>} : memref<1x16x256xf32, #tpu.memory_space<vmem>>, vector<1x16x256xf32>,
    return
  }
  func.func @transform_0(%arg0: i32) -> (i32, i32, i32) {
    %c0_i32 = arith.constant 0 : i32
    %c0_i32_0 = arith.constant 0 : i32
    %c0_i32_1 = arith.constant 0 : i32
    return %arg0, %c0_i32, %c0_i32_0 : i32, i32, i32
  }
  func.func @transform_1(%arg0: i32) -> (i32, i32) {
    %c0_i32 = arith.constant 0 : i32
    %c0_i32_0 = arith.constant 0 : i32
    %c0_i32_1 = arith.constant 0 : i32
    return %c0_i32, %c0_i32_0 : i32, i32
  }
  func.func @transform_2(%arg0: i32) -> (i32, i32) {
    %c0_i32 = arith.constant 0 : i32
    %c0_i32_0 = arith.constant 0 : i32
    %c0_i32_1 = arith.constant 0 : i32
    return %c0_i32, %c0_i32_0 : i32, i32
  }
  func.func @transform_3(%arg0: i32) -> (i32, i32) {
    %c0_i32 = arith.constant 0 : i32
    %c0_i32_0 = arith.constant 0 : i32
    %c0_i32_1 = arith.constant 0 : i32
    return %c0_i32, %c0_i32_0 : i32, i32
  }
  func.func @transform_4(%arg0: i32) -> (i32, i32) {
    %c0_i32 = arith.constant 0 : i32
    %c0_i32_0 = arith.constant 0 : i32
    %c0_i32_1 = arith.constant 0 : i32
    return %c0_i32, %c0_i32_0 : i32, i32
  }
  func.func @transform_5(%arg0: i32) -> (i32, i32, i32) {
    %c0_i32 = arith.constant 0 : i32
    %c0_i32_0 = arith.constant 0 : i32
    %c0_i32_1 = arith.constant 0 : i32
    return %arg0, %c0_i32, %c0_i32_0 : i32, i32, i32
  }
}

</mosaic_0001>

<bundles_post_ra>
// kernel: tpu_custom_call.1
= control target key start
LH: loop header
LB: loop body
LE: loop exit
PB: predicated region body
PF: predicated region fallthrough
CT: control target
= control target key end

     0   :  { %10 = vsyncpa [#allocation3], 0  ;;  %s842_s0 = inlined_call_operand.hbm [shape: f32[2,16,256], index: 0, kind: input, shape index: {}]   ;;  %s843_s1 = inlined_call_operand.vmem [shape: f32[16,8], index: 1, kind: input, shape index: {}]   ;;  %s844_s2 = inlined_call_operand.vmem [shape: f32[1,8], index: 2, kind: input, shape index: {}]   ;;  %s845_s3 = inlined_call_operand.vmem [shape: f32[8,16], index: 3, kind: input, shape index: {}]   ;;  %s846_s4 = inlined_call_operand.vmem [shape: f32[1,16], index: 4, kind: input, shape index: {}]   ;;  %s847_s5 = inlined_call_operand.hbm [shape: f32[2,16,256], index: 5, kind: output, shape index: {}]  }
   0x1   :  { %12 = vsyncpa [#allocation3 + $0x1], 0 }
   0x2   :  { %13 = vsyncpa [#allocation4], 0 }
   0x3   :  { %15 = vsyncpa [#allocation4 + $0x1], 0  ;;  %s680_s18 = smov 0   ;;  %s682_s19 = smov 0  }
   0x4   :  { %s684_s20 = smov 0   ;;  %s686_s21 = smov 0  }
   0x5 LB: > { %s701_s22 = sadd.s32 4294967295, %s644_s21   ;;  %s467_s23 = sadd.s32 4294967294, %s644_s21   ;;  %s644_s21 = sphi %s686_s21, %s857_s21   ;;  %s640_s20 = sphi %s684_s20, %s856_s20   ;;  %s636_s19 = sphi %s682_s19, %s855_s19   ;;  %s632_s18 = sphi %s680_s18, %s854_s18  }
   0x6   : > { %s705_s24 = sadd.s32 1, %s644_s21   ;;  %s28_s25 = sadd.s32 1, %s640_s20 }
   0x7   : > { %s25_s26 = ssub.s32 %s644_s21, %s705_s24  ;;  %p35_p0 = scmp.ne.s32.totalorder %s640_s20, %s636_s19 }
   0x8   : > { %p26_p1 = scmp.eq.s32.totalorder %s25_s26, 0  ;;  %p36_p2 = scmp.eq.s32.totalorder %s644_s21, 0 }
   0x9   : > { %p41_p3 = scmp.ne.s32.totalorder %s636_s19, %s632_s18  ;;  %p42_p4 = scmp.eq.s32.totalorder %s701_s22, 0 }
   0xa   : > { %s717_s27 = scalar_select %p26_p1, %s640_s20, %s28_s25  }
   0xb   : > { %p719_p5 = por %p36_p2, %p35_p0  ;;  %p723_p6 = por %p42_p4, %p41_p3 }
   0xc   : > { %p149_p7 = scmp.eq.s32.totalorder %s701_s22, 1  ;;  %p155_p8 = scmp.eq.s32.totalorder %s467_s23, 1 }
   0xd   : > { %p499_p10 = scmp.lt.s32.totalorder %s644_s21, 2  ;;  %s187_s7 = sand.u32 1, %s640_s20  }
   0xe   : > { %p730_p11 = por %p149_p7, %p35_p0  ;;  %p734_p12 = por %p155_p8, %p41_p3 }
   0xf   : > { %s485_s8 = sshll.u32 %s644_s21, 5  ;;  %s470_s9 = sshll.u32 %s187_s7, 5 }
  0x10   : > { %s196_s12 = scalar_lea.hbm %s842_s0, %s485_s8  ;;  %s191_s14 = scalar_lea.vmem [#allocation2], %s470_s9 }
  0x11   : > { %s197_s13 = sshll.u32 %s196_s12, 4  ;;  %s199_s15 = sshll.u32 %s191_s14, 4  ;;  %s198_s13 = int_to_ptr.hbm [resolvable:$true] %s197_s13  ;;  %s200_s15 = int_to_ptr.vmem [resolvable:$true] %s199_s15 }
  0x12   : > { %p745_p13 = pnand %p499_p10, %p719_p5  ;;  %p473_p0 = scmp.ge.s32.totalorder %s644_s21, 1 }
  0x13   : > { %p207_p1 = scmp.lt.s32.totalorder %s644_s21, 3  ;;  %s188_s17 = scalar_lea.sflag [#allocation3], %s187_s7 }
  0x14   : > { %s548_s23 = sshra.s32 %s198_s13, 4  ;;  %p552_p3 = pneg %p745_p13  ;;  %s549_s23 = int_to_ptr.hbm [resolvable:$true] %s548_s23 }
  0x15   : > { %s550_s25 = scalar_lea.hbm %s549_s23, 32  ;;  %s555_s28 = scalar_lea.hbm %s842_s0, 64 }
  0x16   : > { %p551_p2 = scmp.ne.s32.totalorder %s549_s23, %s550_s25  ;;  %p556_p5 = scmp.lt.s32.totalorder %s549_s23, %s842_s0 }
  0x17   : > { %p557_p8 = scmp.lt.s32.totalorder %s555_s28, %s550_s25 }
  0x18   : > { %p553_p4 = pnand %p552_p3, %p551_p2 }
  0x19   : > { %p558_p10 = por %p557_p8, %p556_p5 }
  0x1a   : > { %p554_p7 = pneg %p553_p4 }
  0x1c   : > { %p559_p9 = pnand %p558_p10, %p554_p7 }
  0x1e   : > { %562 = shalt.err (!%p559_p9)
}
  0x1f   : > { %s646_s7 = smov 256   ;;  %s647_s11 = smov 16  }
  0x20   : > { %494 = dma.hbm_to_vmem [thread:$0]  (!%p745_p13), %s198_s13, 512, %s200_s15, %s188_s17, %s646_s7, %s646_s7, %s647_s11  }
  0x21   : > { %p208_p2 = pnand %p473_p0, %p207_p1 }
  0x22   : > { %s766_s12 = sand.u32 (!%p208_p2), 1, %s636_s19  }
  0x23   : > { %211 = sbr.rel (%p208_p2) target bundleno = 627 (0x273), region = 40  ;;  %s474_s14 = sshll.u32 (!%p208_p2), %s766_s12, 5 }
  0x24   : > { %s214_s23 = scalar_lea.sflag (!%p208_p2), [#allocation3], %s766_s12  ;;  %s217_s25 = scalar_lea.vmem (!%p208_p2), [#allocation2], %s474_s14 }
  0x28   : > { %623 = dma.done.wait (%p723_p6), %s214_s23, 512  }
  0x29   : > { %625 = vsyncadd (%p723_p6), %s214_s23, 4294966784  ;;  %v776_v0 = vld [vmem:[%s217_s25] sm:$0xff]  ;;  %v778_v1 = vld [vmem:[%s217_s25 + $0x8] sm:$0xff]  ;;  %v262_v9 = vlaneseq  ;;  %vm267_vm0 = vcmask 130112   ;;  %vm269_vm1 = vcmask 130048   ;;  %vm314_vm6 = vcmask 64512  }
  0x2a   : > { %v249_v2 = vadd.f32 %v778_v1, %v776_v0  ;;  %v782_v3 = vld [vmem:[%s217_s25 + $0x10] sm:$0xff]  ;;  %v784_v4 = vld [vmem:[%s217_s25 + $0x18] sm:$0xff]  ;;  %v258_v6 = vld [vmem:[%s843_s1 + $0x8] sm:$0xff]  ;;  %s244_s7 = scalar_lea.vmem [#allocation5], %s474_s14  ;;  %s486_s11 = sshll.u32 %s701_s22, 5 }
  0x2b   : > { %v252_v5 = vadd.f32 %v784_v4, %v782_v3  ;;  %286 = vmatpush.msra.mxu0 %v258_v6  ;;  %v257_v7 = vld [vmem:[%s843_s1] sm:$0xff]  ;;  %v263_v10 = vand.u32 127, %v262_v9  ;;  %v359_v36 = vshrl.u32 %v262_v9, 7  ;;  %s390_s13 = scalar_lea.hbm %s847_s5, %s486_s11  ;;  %s391_s15 = sshll.u32 %s244_s7, 4  ;;  %s392_s15 = int_to_ptr.vmem [resolvable:$true] %s391_s15 }
  0x2c   : > { %250 = vadd.xlane.f32.xlu0 %v249_v2  ;;  %v259_v18 = vld [vmem:[%s844_s2] sm:$0x1]  ;;  %s393_s29 = sshll.u32 %s390_s13, 4  ;;  %s379_s14 = scalar_lea.sflag [#allocation4], %s766_s12  ;;  %s394_s29 = int_to_ptr.hbm [resolvable:$true] %s393_s29 }
  0x2d   : > { %287 = vmatpush.msra.mxu0 %v257_v7  ;;  %v265_v12 = vadd.s32 4294967288, %v263_v10  ;;  %v312_v19 = vld [vmem:[%s845_s3] sm:$0xff]  ;;  %537 = vset.pattern.permute.xlu1 %v359_v36  ;;  %v366_v37 = vadd.s32 8, %v359_v36  ;;  %s592_s16 = sshra.s32 %s394_s29, 4  ;;  %s598_s8 = scalar_lea.hbm %s847_s5, 64  ;;  %s593_s16 = int_to_ptr.hbm [resolvable:$true] %s592_s16 }
  0x2e   : > { %333 = vmatpush.msra.mxu1 %v312_v19  ;;  %v313_v38 = vld [vmem:[%s846_s4] sm:$0x1]  ;;  %s594_s22 = scalar_lea.hbm %s593_s16, 32  ;;  %p599_p0 = scmp.lt.s32.totalorder %s593_s16, %s847_s5 }
  0x2f   : > { %539 = vset.pattern.permute.xlu0 %v366_v37  ;;  %p595_p6 = scmp.ne.s32.totalorder %s593_s16, %s594_s22  ;;  %p600_p1 = scmp.lt.s32.totalorder %s598_s8, %s594_s22 }
  0x31   : > { %p596_p9 = pnand %p595_p6, %p730_p11  ;;  %p601_p3 = por %p600_p1, %p599_p0 }
  0x33   : > { %p597_p13 = pneg %p596_p9 }
  0x34   : > { %253 = vadd.xlane.f32.xlu0 %v252_v5 }
  0x35   : > { %p602_p4 = pnand %p601_p3, %p597_p13 }
  0x9f   : > { %v251_v8 = vpop.xlane.xlu0 %250 }
  0xa0   : > { %v255_v11 = vmul.f32 0.00390625, %v251_v8 }
  0xa2   : > { %v264_v15 = vperm.slane %v255_v11, %v263_v10 }
  0xa7   : > { %v254_v13 = vpop.xlane.xlu0 %253 }
  0xa8   : > { %v256_v14 = vmul.f32 0.00390625, %v254_v13 }
  0xaa   : > { %v266_v16 = vperm.slane %v256_v14, %v265_v12 }
  0xac   : > { %v268_v17 = vsel %vm267_vm0, %v266_v16, %v264_v15 }
  0xad   : > { %476 = vmatmul.msk.f32.vlgmr.msra.gmra.mxu0 %vm269_vm1, %v268_v17 }
 0x12a   : > { %v289_v20 = vpop.f32.mrf.mxu0 }
 0x12b   : > { %v290_v21 = vadd.f32 %v289_v20, %v259_v18 }
 0x12d   : > { %v477_v22 = vmul.f32 -1.442695, %v290_v21 }
 0x12f   : > { %540 = vpow2.f32 %v477_v22 }
 0x135   : > { %v541_v23 = vpop.eup %540 }
 0x136   : > { %v295_v24 = vadd.f32 1.0, %v541_v23 }
 0x138   : > { %542 = vrcp.f32 %v295_v24  ;;  %v307_v28 = vand.u32 2147483648, %v295_v24  ;;  %v305_v30 = vand.u32 2147483647, %v295_v24  ;;  %vm301_vm3 = vweird.f32 %v295_v24 }
 0x13a   : > { %v308_v32 = vor.u32 1.1754944e-38, %v307_v28  ;;  %vm306_vm5 = vcmp.eq.f32.partialorder %v305_v30, 8.507059e+37 }
 0x13e   : > { %v543_v25 = vpop.eup %542 }
 0x13f   : > { %v297_v26 = vmul.f32 %v543_v25, %v295_v24  ;;  %vm302_vm2 = vweird.f32 %v543_v25 }
 0x140   : > { %vm303_vm4 = vmor %vm301_vm3, %vm302_vm2 }
 0x141   : > { %v298_v27 = vsub.f32 1.0, %v297_v26 }
 0x143   : > { %v299_v29 = vmul.f32 %v543_v25, %v298_v27 }
 0x145   : > { %v300_v31 = vadd.f32 %v543_v25, %v299_v29 }
 0x147   : > { %v304_v33 = vsel %vm303_vm4, %v543_v25, %v300_v31 }
 0x148   : > { %v309_v34 = vsel %vm306_vm5, %v308_v32, %v304_v33 }
 0x149   : > { %v311_v35 = vmul.f32 %v309_v34, %v290_v21 }
 0x14b   : > { %478 = vmatmul.msk.f32.vlgmr.msra.gmra.mxu1 %vm314_vm6, %v311_v35 }
 0x1c8   : > { %v335_v39 = vpop.f32.mrf.mxu1 }
 0x1c9   : > { %v336_v40 = vadd.f32 %v335_v39, %v313_v38 }
 0x1cb   : > { %v479_v41 = vmul.f32 -1.442695, %v336_v40 }
 0x1cd   : > { %544 = vpow2.f32 %v479_v41 }
 0x1d3   : > { %v545_v42 = vpop.eup %544 }
 0x1d4   : > { %v341_v43 = vadd.f32 1.0, %v545_v42 }
 0x1d6   : > { %546 = vrcp.f32 %v341_v43  ;;  %v353_v47 = vand.u32 2147483648, %v341_v43  ;;  %v351_v49 = vand.u32 2147483647, %v341_v43  ;;  %vm347_vm8 = vweird.f32 %v341_v43 }
 0x1d8   : > { %v354_v51 = vor.u32 1.1754944e-38, %v353_v47  ;;  %vm352_vm10 = vcmp.eq.f32.partialorder %v351_v49, 8.507059e+37 }
 0x1dc   : > { %v547_v44 = vpop.eup %546 }
 0x1dd   : > { %v343_v45 = vmul.f32 %v547_v44, %v341_v43  ;;  %vm348_vm7 = vweird.f32 %v547_v44 }
 0x1de   : > { %vm349_vm9 = vmor %vm347_vm8, %vm348_vm7 }
 0x1df   : > { %v344_v46 = vsub.f32 1.0, %v343_v45 }
 0x1e1   : > { %v345_v48 = vmul.f32 %v547_v44, %v344_v46 }
 0x1e3   : > { %v346_v50 = vadd.f32 %v547_v44, %v345_v48 }
 0x1e5   : > { %v350_v52 = vsel %vm349_vm9, %v547_v44, %v346_v50 }
 0x1e6   : > { %v355_v53 = vsel %vm352_vm10, %v354_v51, %v350_v52 }
 0x1e7   : > { %v357_v54 = vperm.slane %v355_v53, 0 }
 0x1e9   : > { %362 = vperm.xlu1 %537, %v357_v54  }
 0x1f1   : > { %538 = vset.pattern.permute.xlu1 %v366_v37 }
 0x1f9   : > { %368 = vperm.xlu1 %538, %v357_v54  }
 0x25b   : > { %v363_v55 = vpop.permute.xlu1 %362 }
 0x25c   : > { %v370_v56 = vmul.f32 %v363_v55, %v776_v0  ;;  %v371_v57 = vmul.f32 %v363_v55, %v778_v1 }
 0x25e   : > { %374 = vst [vmem:[%s244_s7] sm:$0xff] %v370_v56 }
 0x25f   : > { %375 = vst [vmem:[%s244_s7 + $0x8] sm:$0xff] %v371_v57 }
 0x26b   : > { %v369_v58 = vpop.permute.xlu1 %368 }
 0x26c   : > { %v372_v59 = vmul.f32 %v369_v58, %v782_v3  ;;  %v373_v60 = vmul.f32 %v369_v58, %v784_v4 }
 0x26e   : > { %376 = vst [vmem:[%s244_s7 + $0x10] sm:$0xff] %v372_v59 }
 0x26f   : > { %377 = vst [vmem:[%s244_s7 + $0x18] sm:$0xff] %v373_v60 }
 0x270   : > { %605 = shalt.err (!%p602_p4)
}
 0x271   : > { %s648_s12 = smov 256   ;;  %s649_s10 = smov 16  }
 0x272   : > { %489 = dma.vmem_to_hbm [thread:$0]  (%p730_p11), %s392_s15, 512, %s394_s29, %s379_s14, %s648_s12, %s648_s12, %s649_s10  }
 0x273 PF: > { %s408_s7 = sand.u32 1, %s632_s18   ;;  %p853_p7 = scmp.ge.s32.totalorder %s644_s21, 2 }
 0x274   : > { %s409_s11 = scalar_lea.sflag [#allocation4], %s408_s7 }
 0x275   : > { %p496_p5 = pnand %p853_p7, %p734_p12 }
 0x277   : > { %p497_p8 = pneg %p496_p5 }
 0x279   : > { %627 = dma.done.wait (%p497_p8), %s409_s11, 512  }
 0x27a   : > { %629 = vsyncadd (%p497_p8), %s409_s11, 4294966784  ;;  %p18_p10 = scmp.ge.s32.totalorder %s705_s24, 4   ;;  %s854_s18 = smov %s636_s19 }
 0x27b   : > { %s855_s19 = smov %s640_s20  ;;  %s856_s20 = smov %s717_s27 }
 0x27c   : > { %s857_s21 = smov %s705_s24  ;;  %20 = sbr.rel (!%p18_p10) target bundleno = 5 (0x5), region = 85 }
 0x281   :  { %415 = vsyncpa [#allocation3], 1 }
 0x282   :  { %417 = vsyncpa [#allocation3 + $0x1], 1 }
 0x283   :  { %418 = vsyncpa [#allocation4], 1 }
 0x284   :  { %420 = vsyncpa [#allocation4 + $0x1], 1 }

</bundles_post_ra>
